<compile_context>
chip_gen: v6e
topology: v6e:2x2x1
jax: 0.10.0
libtpu: 0.0.40
codegen_flags: <defaults>
</compile_context>

<pallas_src>
import math
import numpy as np
import jax
import jax.numpy as jnp
from jax.experimental import pallas as pl
from jax.experimental.pallas import tpu as pltpu

POOL_HW = 14                        # TokenDownLayer target spatial size (14, 14)
NT = POOL_HW * POOL_HW              # 196 output tokens per image
NPAD = 200                          # pooled slab rows, padded to a multiple of 8
# flat-index offset of each 3x3 depthwise-conv tap: a = 14*(di-1) + (dj-1)
_TAPS = [(di, dj, POOL_HW * (di - 1) + (dj - 1))
         for di in range(3) for dj in range(3)]

_SQRT_2_OVER_PI = 0.7978845608028654


def _gelu_tanh(x):
    # torch nn.GELU() is erf-based; the tanh approximation deviates by <~1e-3,
    # below the bf16-MXU error already present in this kernel.
    # TODO(synk): switch to exact erf if bit-faithful GELU is ever required.
    return 0.5 * x * (1.0 + jnp.tanh(_SQRT_2_OVER_PI * (x + 0.044715 * x * x * x)))


# ---------------------------------------------------------------------------
# one-time probe of pltpu.roll's shift convention (np.roll-style or reversed),
# so the tap shifts below are always consistent with the hardware rotate op.
# ---------------------------------------------------------------------------
_ROLL_IS_NUMPY_STYLE = None


def _roll_is_numpy_style():
    global _ROLL_IS_NUMPY_STYLE
    if _ROLL_IS_NUMPY_STYLE is None:
        def k(x_ref, o_ref):
            o_ref[...] = pltpu.roll(x_ref[...], 1, 0)
        x = jax.lax.broadcasted_iota(jnp.float32, (8, 128), 0)
        y = pl.pallas_call(
            k, out_shape=jax.ShapeDtypeStruct((8, 128), jnp.float32))(x)
        # np.roll-style (out[i] = in[i - shift]) => row 1 holds old row 0.
        _ROLL_IS_NUMPY_STYLE = bool(float(jax.device_get(y[1, 0])) == 0.0)
    return _ROLL_IS_NUMPY_STYLE


# ---------------------------------------------------------------------------
# Pallas kernel: per batch block of bblk images (= bblk//2 lane-packed pairs)
#   y      = GELU(x @ W1 + b1) @ W2 + b2                  (bblk*N, C)
#   pooled = K_pad @ [y_a | y_b]                          (NPAD, 2C) per pair
#   out    = pooled + b_dw + sum_t roll_t(pooled) * plane_t   (per pair)
# ---------------------------------------------------------------------------
def _make_kernel(shifts):
    def kernel(x_ref, w1_ref, b1_ref, w2_ref, b2_ref, k_ref,
               planes_ref, bias2_ref, o_ref):
        n_pairs = o_ref.shape[0]
        n_tok = k_ref.shape[1]                  # input tokens per image (h*h)

        # ---- MLP on the flattened slab: bf16 MXU, f32 accumulate -----------
        x = x_ref[...]                                                 # bf16
        h = jnp.dot(x, w1_ref[...],
                    preferred_element_type=jnp.float32) + b1_ref[0, :]
        h = _gelu_tanh(h)
        y = jnp.dot(h.astype(jnp.bfloat16), w2_ref[...],
                    preferred_element_type=jnp.float32) + b2_ref[0, :]  # (bblk*N, C) f32

        kmat = k_ref[...]                       # (NPAD, N) bf16
        bias2 = bias2_ref[0, :]                 # (2C,) f32

        for p in range(n_pairs):
            # lane-pack the pair into a 128-lane RHS for the pooling matmul.
            ya = y[(2 * p) * n_tok:(2 * p + 1) * n_tok, :]
            yb = y[(2 * p + 1) * n_tok:(2 * p + 2) * n_tok, :]
            rhs = jnp.concatenate([ya, yb], axis=1).astype(jnp.bfloat16)

            # TokenDownLayer: AdaptiveAvgPool2d((14, 14)) as one matmul.
            pooled = jnp.dot(kmat, rhs,
                             preferred_element_type=jnp.float32)       # (NPAD, 2C)

            # PosInjectLayer: depthwise 3x3 conv (zero pad) + bias + residual,
            # as 9 XLU rolls * precomputed masked per-channel weight planes.
            acc = pooled + bias2
            for t, s in enumerate(shifts):
                shifted = pooled if s == 0 else pltpu.roll(pooled, s, 0)
                acc = acc + shifted * planes_ref[t]

            # lane-dense (196, 2C=128) store; pad rows are dropped here.
            o_ref[p] = acc[:NT, :].astype(o_ref.dtype)

    return kernel


# ---------------------------------------------------------------------------
# static structural operators (shape-only / parameter preprocessing)
# ---------------------------------------------------------------------------
def adaptive_pool_matrix(in_size, out_size):
    """Row-stochastic matrix reproducing torch AdaptiveAvgPool1d windows."""
    P = np.zeros((out_size, in_size), np.float32)
    for i in range(out_size):
        start = (i * in_size) // out_size
        end = -(-((i + 1) * in_size) // out_size)  # ceil
        P[i, start:end] = 1.0 / (end - start)
    return P


def _build_tap_planes(wdw):
    """(9, NPAD, 2C) masked per-channel-weight planes, pair-tiled along lanes.

    planes[t, dest] = w_dw[t] if the 3x3-conv source of `dest` lies inside the
    14x14 image, else 0.  Pad rows (>= NT) are zero.  Because the masks zero
    every out-of-image destination, in-kernel roll wrap-around is harmless.
    """
    rows = np.arange(NT) // POOL_HW
    cols = np.arange(NT) % POOL_HW
    masks = np.zeros((9, NPAD), np.float32)
    for t, (di, dj, _) in enumerate(_TAPS):
        valid = ((rows + di - 1 >= 0) & (rows + di - 1 < POOL_HW) &
                 (cols + dj - 1 >= 0) & (cols + dj - 1 < POOL_HW))
        masks[t, :NT] = valid
    masks = jnp.asarray(masks)
    planes = masks[:, :, None] * wdw[:, None, :]            # (9, NPAD, C)
    return jnp.concatenate([planes, planes], axis=-1)        # (9, NPAD, 2C)


def _pick_bblk(B, N):
    # pair packing needs an even bblk; keep the x BlockSpec sublane-divisible
    # and the grid length >= 2 whenever the batch allows it.
    for cand in (8, 4, 2):
        if (cand * N) % 8 != 0:
            continue
        if B >= 2 * cand:
            return cand
    # tiny or awkward batch: single grid step over the whole (even-padded)
    # batch; the x block then equals the full array extent (always legal).
    return 2 * ((B + 1) // 2)


# ---------------------------------------------------------------------------
# wrapper
# ---------------------------------------------------------------------------
def fused_ldp_forward(x, W1, b1, W2, b2, wdw, bdw):
    B, N, Din = x.shape
    h_in = int(round(math.sqrt(N)))
    assert h_in * h_in == N
    D1 = W1.shape[1]
    C = W2.shape[1]
    out_dtype = x.dtype

    bblk = _pick_bblk(B, N)
    B_pad = -(-B // bblk) * bblk
    if B_pad != B:
        x = jnp.concatenate(
            [x, jnp.zeros((B_pad - B, N, Din), x.dtype)], axis=0)

    # bf16 operands for all MXU matmuls; biases / planes stay f32 (VPU adds).
    x2 = x.astype(jnp.bfloat16).reshape(B_pad * N, Din)
    W1b = W1.astype(jnp.bfloat16)
    W2b = W2.astype(jnp.bfloat16)

    # pooling matrix, zero-padded to NPAD rows.
    Ph = adaptive_pool_matrix(h_in, POOL_HW)
    Kpad = np.zeros((NPAD, N), np.float32)
    Kpad[:NT] = np.kron(Ph, Ph)
    Kb = jnp.asarray(Kpad, dtype=jnp.bfloat16)

    planes = _build_tap_planes(wdw)                     # (9, NPAD, 2C) f32
    bias2 = jnp.concatenate([bdw, bdw], axis=1)         # (1, 2C) f32

    # tap shift amounts, direction-checked once against the hardware op.
    sign = -1 if _roll_is_numpy_style() else 1
    shifts = tuple((sign * a) % NPAD for (_, _, a) in _TAPS)

    n_pairs = bblk // 2
    grid = (B_pad // bblk,)

    out_pairs = pl.pallas_call(
        _make_kernel(shifts),
        out_shape=jax.ShapeDtypeStruct((B_pad // 2, NT, 2 * C), out_dtype),
        grid_spec=pltpu.PrefetchScalarGridSpec(
            num_scalar_prefetch=0,
            grid=grid,
            in_specs=[
                pl.BlockSpec((bblk * N, Din), lambda i: (i, 0)),      # x (flattened, bf16)
                pl.BlockSpec((Din, D1), lambda i: (0, 0)),            # W1
                pl.BlockSpec((1, D1), lambda i: (0, 0)),              # b1
                pl.BlockSpec((D1, C), lambda i: (0, 0)),              # W2
                pl.BlockSpec((1, C), lambda i: (0, 0)),               # b2
                pl.BlockSpec((NPAD, N), lambda i: (0, 0)),            # pooling matrix
                pl.BlockSpec((9, NPAD, 2 * C), lambda i: (0, 0, 0)),  # masked tap planes
                pl.BlockSpec((1, 2 * C), lambda i: (0, 0)),           # depthwise bias (pair)
            ],
            out_specs=pl.BlockSpec((n_pairs, NT, 2 * C), lambda i: (i, 0, 0)),
        ),
        compiler_params=pltpu.CompilerParams(
            dimension_semantics=("parallel",)),
    )(x2, W1b, b1, W2b, b2, Kb, planes, bias2)

    # de-interleave the pair-packed lanes: (P, NT, 2C) -> (B_pad, NT, C)
    out = out_pairs.reshape(B_pad // 2, NT, 2, C).transpose(0, 2, 1, 3)
    out = out.reshape(B_pad, NT, C)
    return out[:B]


# ---------------------------------------------------------------------------
# pure-JAX reference (follows the PyTorch module step by step, all f32)
# ---------------------------------------------------------------------------
def reference_forward(x, W1, b1, W2, b2, wdw, bdw):
    B, N, _ = x.shape
    h = int(math.sqrt(N))
    C = W2.shape[1]
    z = jax.nn.gelu(x @ W1 + b1, approximate=False)
    y = z @ W2 + b2                                            # (B, N, C)
    y3 = y.reshape(B, h, h, C)
    # AdaptiveAvgPool2d((14, 14)) semantics
    rows = []
    for i in range(POOL_HW):
        rs, re = (i * h) // POOL_HW, -(-((i + 1) * h) // POOL_HW)
        cols = []
        for j in range(POOL_HW):
            cs, ce = (j * h) // POOL_HW, -(-((j + 1) * h) // POOL_HW)
            cols.append(y3[:, rs:re, cs:ce, :].mean(axis=(1, 2)))
        rows.append(jnp.stack(cols, axis=1))
    pooled3 = jnp.stack(rows, axis=1)                          # (B, 14, 14, C)
    # depthwise 3x3 conv, pad=1, + bias + residual
    w3 = wdw.reshape(3, 3, C)
    pp = jnp.pad(pooled3, ((0, 0), (1, 1), (1, 1), (0, 0)))
    acc = jnp.zeros_like(pooled3)
    for di in range(3):
        for dj in range(3):
            acc = acc + pp[:, di:di + POOL_HW, dj:dj + POOL_HW, :] * w3[di, dj]
    out = acc + bdw + pooled3
    return out.reshape(B, POOL_HW * POOL_HW, C)


# ---------------------------------------------------------------------------
if __name__ == "__main__":
    # small shapes: fused_vision_dim=32, llm_dim=64, 16x16=256 input tokens,
    # batch 8 -> bblk=4, grid=(2,) so the parallel axis has >= 2 steps.
    B, H, Din, Dllm = 8, 16, 32, 64
    N = H * H
    D1 = Din * 4  # initial_projection_dim

    key = jax.random.PRNGKey(0)
    ks = jax.random.split(key, 7)
    x = jax.random.normal(ks[0], (B, N, Din), jnp.float32)

    # deterministic synthetic parameters (shapes from the module's __init__)
    W1 = jax.random.normal(ks[1], (Din, D1), jnp.float32) / np.sqrt(Din)
    b1 = jax.random.normal(ks[2], (1, D1), jnp.float32) * 0.01
    W2 = jax.random.normal(ks[3], (D1, Dllm), jnp.float32) / np.sqrt(D1)
    b2 = jax.random.normal(ks[4], (1, Dllm), jnp.float32) * 0.01
    # torch Conv2d(llm_dim, llm_dim, 3, groups=llm_dim) weight: (C, 1, 3, 3)
    w_conv = jax.random.normal(ks[5], (Dllm, 1, 3, 3), jnp.float32) / 3.0
    wdw = jnp.transpose(w_conv[:, 0], (1, 2, 0)).reshape(9, Dllm)   # (9, C)
    bdw = jax.random.normal(ks[6], (1, Dllm), jnp.float32) * 0.01

    out = fused_ldp_forward(x, W1, b1, W2, b2, wdw, bdw)
    out = jax.block_until_ready(out)

    ref = reference_forward(x, W1, b1, W2, b2, wdw, bdw)
    np.testing.assert_allclose(np.asarray(out), np.asarray(ref),
                               rtol=5e-2, atol=5e-2)
    print("KERNEL_OK")
</pallas_src>

<mosaic_0001>
module attributes {stable_mosaic.version = 11 : i64} {
  func.func @k(%arg0: memref<8x128xf32, #tpu.memory_space<vmem>>, %arg1: memref<8x128xf32, #tpu.memory_space<vmem>>) attributes {dimension_semantics = [], scalar_prefetch = 0 : i64, scratch_operands = 0 : i64, tpu.core_type = #tpu.core_type<tc>} {
    %c0 = arith.constant 0 : index
    %c0_0 = arith.constant 0 : index
    %0 = vector.load %arg0[%c0, %c0_0] : memref<8x128xf32, #tpu.memory_space<vmem>>, vector<8x128xf32>
    %c1_i32 = arith.constant 1 : i32
    %1 = tpu.dynamic_rotate %0 by %c1_i32 dim 0 : vector<8x128xf32>, i32 -> vector<8x128xf32>
    %c0_1 = arith.constant 0 : index
    %c0_2 = arith.constant 0 : index
    %2 = vector.load %arg1[%c0_1, %c0_2] : memref<8x128xf32, #tpu.memory_space<vmem>>, vector<8x128xf32>
    tpu.vector_store %arg1[%c0_1, %c0_2], %1 {strides = array<i32>} : memref<8x128xf32, #tpu.memory_space<vmem>>, vector<8x128xf32>,
    return
  }
}

</mosaic_0001>

<bundles_post_ra>
// kernel: tpu_custom_call.1
= control target key start
LH: loop header
LB: loop body
LE: loop exit
PB: predicated region body
PF: predicated region fallthrough
CT: control target
= control target key end

     0   :  { %6 = vsyncpa [#allocation3], 0  ;;  %s103_s0 = inlined_call_operand.hbm [shape: f32[8,128], index: 0, kind: input, shape index: {}]   ;;  %s104_s1 = inlined_call_operand.hbm [shape: f32[8,128], index: 1, kind: output, shape index: {}]  }
   0x1   :  { %7 = vsyncpa [#allocation4], 0  ;;  %s85_s6 = smov [#allocation2]  }
   0x2   :  { %s14_s7 = sshll.u32 %s85_s6, 4  ;;  %s15_s7 = int_to_ptr.vmem [resolvable:$true] %s14_s7 }
   0x3   :  { %s49_s8 = scalar_lea.vmem %s15_s7, 128  ;;  %p54_p1 = scmp.lt.s32.totalorder %s15_s7, %s15_s7 }
   0x4   :  { %p50_p0 = scmp.ne.s32.totalorder %s15_s7, %s49_s8  ;;  %p55_p2 = scmp.lt.s32.totalorder %s49_s8, %s49_s8 }
   0x6   :  { %p56_p3 = por %p55_p2, %p54_p1 }
   0x8   :  { %p57_p4 = pnand %p56_p3, %p50_p0 }
   0xa   :  { %60 = shalt.err (!%p57_p4)
}
   0xb   :  { %17 = dma.hbm_to_vmem [thread:$0]  %s103_s0, 128, %s15_s7, [#allocation3]  }
   0xc   :  { %81 = dma.done.wait [#allocation3], 128  }
   0xd   :  { %82 = vsyncadd [#allocation3], 4294967168  ;;  %s86_s11 = smov [#allocation5]   ;;  %v21_v0 = vld [vmem:[#allocation2] sm:$0xff] }
   0xe   :  { %s30_s12 = sshll.u32 %s86_s11, 4  ;;  %v22_v1 = vrot.slane %v21_v0, 7  ;;  %s31_s12 = int_to_ptr.vmem [resolvable:$true] %s30_s12 }
   0xf   :  { %s61_s13 = scalar_lea.vmem %s31_s12, 128  ;;  %p66_p6 = scmp.lt.s32.totalorder %s31_s12, %s31_s12 }
  0x10   :  { %23 = vst [vmem:[#allocation5] sm:$0xff] %v22_v1  ;;  %p62_p5 = scmp.ne.s32.totalorder %s31_s12, %s61_s13  ;;  %p67_p7 = scmp.lt.s32.totalorder %s61_s13, %s61_s13 }
  0x12   :  { %p68_p8 = por %p67_p7, %p66_p6 }
  0x14   :  { %p69_p9 = pnand %p68_p8, %p62_p5 }
  0x16   :  { %72 = shalt.err (!%p69_p9)
}
  0x17   :  { %33 = dma.vmem_to_hbm [thread:$0]  %s31_s12, 128, %s104_s1, [#allocation4]  }
  0x18   :  { %83 = dma.done.wait [#allocation4], 128  }
  0x19   :  { %84 = vsyncadd [#allocation4], 4294967168 }
  0x1a   :  { %37 = vsyncpa [#allocation3], 1 }
  0x1b   :  { %38 = vsyncpa [#allocation4], 1 }

</bundles_post_ra>
